<compile_context>
chip_gen: v7x
topology: tpu7x:2x2x1
jax: 0.10.0
libtpu: 0.0.40
codegen_flags: <defaults>
</compile_context>

<pallas_src>
import functools

import jax
import jax.numpy as jnp
from jax.experimental import pallas as pl
from jax.experimental.pallas import tpu as pltpu


def _round_up(x, m):
    return (x + m - 1) // m * m


def _stacked_gru_kernel(x0_ref, h_ref, wih_ref, whh_ref, bgi_ref, bhn_ref,
                        o_ref, x_ref, *, p):
    """One grid step == one GRU layer.

    x0_ref  : (Bp, P)       padded layer-0 input features (f32, fetched once)
    h_ref   : (1, Bp, P)    padded hidden state of this layer (f32)
    wih_ref : (1, P, 3P)    W_ih^T for this layer (bf16 or f32), gates [r|z|n]
    whh_ref : (1, P, 3P)    W_hh^T for this layer (bf16 or f32), gates [r|z|n]
    bgi_ref : (1, 1, 3P)    [b_ih_r+b_hh_r | b_ih_z+b_hh_z | b_ih_n]  (f32)
    bhn_ref : (1, 1, P)     b_hh_n  (f32, added inside r * (...))
    o_ref   : (1, Bp, P)    new hidden state of this layer
    x_ref   : (Bp, P) VMEM  carried activation across layers, f32
    """
    P = p
    layer = pl.program_id(0)

    @pl.when(layer == 0)
    def _():
        # Seed the carried activation with the (padded) layer-0 input.
        x_ref[...] = x0_ref[...].astype(jnp.float32)

    h = h_ref[0]                                       # (Bp, P) f32

    # Cast MXU operands to the weight dtype (bf16 in the production path);
    # accumulate in f32.  Two dense dots -- no structural-zero K-passes.
    mxu_dtype = wih_ref.dtype
    x_b = x_ref[...].astype(mxu_dtype)
    h_b = h.astype(mxu_dtype)

    gi = jnp.dot(x_b, wih_ref[0], preferred_element_type=jnp.float32) + bgi_ref[0]
    gh = jnp.dot(h_b, whh_ref[0], preferred_element_type=jnp.float32)

    # Lane-aligned gate slices (each gate lives at a P=128-aligned offset).
    i_r, i_z, i_n = gi[:, 0:P], gi[:, P:2 * P], gi[:, 2 * P:3 * P]
    h_r, h_z, h_n = gh[:, 0:P], gh[:, P:2 * P], gh[:, 2 * P:3 * P]

    r = jax.nn.sigmoid(i_r + h_r)                      # r/z biases already summed in gi
    z = jax.nn.sigmoid(i_z + h_z)
    n = jnp.tanh(i_n + r * (h_n + bhn_ref[0]))
    h_new = (1.0 - z) * n + z * h                      # all gate math in f32

    o_ref[0] = h_new.astype(o_ref.dtype)
    # Carry the activation to the next layer in f32 (no HBM round-trip).
    x_ref[...] = h_new
    # TODO(synk): training-mode inter-layer dropout (dropout > 0) not implemented.


def prepare_stacked_params(params, input_size, hidden_size, lane=128,
                           weight_dtype=jnp.bfloat16):
    """One-time parameter preparation (transpose / pad / pack / bias pre-sum).

    Returns dict with:
      w_ih : (L, P, 3P) weight_dtype   rows [0:in_l], cols [g*P : g*P+H] <- W_ih^T gate g
      w_hh : (L, P, 3P) weight_dtype   rows [0:H],    cols [g*P : g*P+H] <- W_hh^T gate g
      b_gi : (L, 1, 3P) f32            [b_ih_r+b_hh_r | b_ih_z+b_hh_z | b_ih_n]
      b_hn : (L, 1, P)  f32            b_hh_n
    P = max(input_size, hidden_size) rounded up to 128 lanes.
    """
    L = len(params)
    H = hidden_size
    P = max(_round_up(input_size, lane), _round_up(H, lane))

    w_ih_cat = jnp.zeros((L, P, 3 * P), weight_dtype)
    w_hh_cat = jnp.zeros((L, P, 3 * P), weight_dtype)
    b_gi_cat = jnp.zeros((L, 1, 3 * P), jnp.float32)
    b_hn_cat = jnp.zeros((L, 1, P), jnp.float32)

    for l, (w_ih, w_hh, b_ih, b_hh) in enumerate(params):
        in_l = w_ih.shape[1]
        wih_t = jnp.transpose(w_ih).astype(weight_dtype)   # (in_l, 3H)
        whh_t = jnp.transpose(w_hh).astype(weight_dtype)   # (H, 3H)
        for g in range(3):
            w_ih_cat = w_ih_cat.at[l, :in_l, g * P:g * P + H].set(
                wih_t[:, g * H:(g + 1) * H])
            w_hh_cat = w_hh_cat.at[l, :H, g * P:g * P + H].set(
                whh_t[:, g * H:(g + 1) * H])
        b_ih32 = b_ih.astype(jnp.float32)
        b_hh32 = b_hh.astype(jnp.float32)
        # r and z gates: biases pre-summed; n gate: keep b_ih_n in gi, b_hh_n separate.
        b_gi_cat = b_gi_cat.at[l, 0, 0:H].set(b_ih32[0:H] + b_hh32[0:H])
        b_gi_cat = b_gi_cat.at[l, 0, P:P + H].set(b_ih32[H:2 * H] + b_hh32[H:2 * H])
        b_gi_cat = b_gi_cat.at[l, 0, 2 * P:2 * P + H].set(b_ih32[2 * H:3 * H])
        b_hn_cat = b_hn_cat.at[l, 0, 0:H].set(b_hh32[2 * H:3 * H])

    return dict(w_ih=w_ih_cat, w_hh=w_hh_cat, b_gi=b_gi_cat, b_hn=b_hn_cat, P=P)


def stacked_gru_forward(prepared, inp, hidden, dropout=0.0):
    """Pallas equivalent of StackedGRU.forward (eval / dropout=0 path).

    inp:    (1, B, I)
    hidden: (L, B, H)
    returns (out, states) with out: (1, B, H), states: (L, B, H)
    """
    assert inp.ndim == 3 and inp.shape[0] == 1
    P = prepared["P"]
    w_ih, w_hh = prepared["w_ih"], prepared["w_hh"]
    b_gi, b_hn = prepared["b_gi"], prepared["b_hn"]

    L, B, H = hidden.shape
    I = inp.shape[-1]
    Bp = max(_round_up(B, 8), 8)

    # Zero-pad batch to 8 sublanes and features/hidden to P lanes; the padded
    # weight/bias layout keeps padded lanes/rows exactly zero through the update.
    x0 = jnp.zeros((Bp, P), jnp.float32).at[:B, :I].set(inp[0].astype(jnp.float32))
    h0 = jnp.zeros((L, Bp, P), jnp.float32).at[:, :B, :H].set(
        hidden.astype(jnp.float32))

    kernel = functools.partial(_stacked_gru_kernel, p=P)

    wbytes = jnp.dtype(w_ih.dtype).itemsize
    cost = pl.CostEstimate(
        flops=int(4 * L * Bp * P * 3 * P),            # two (Bp,P)x(P,3P) dots / layer
        transcendentals=int(3 * L * Bp * P),          # 2x sigmoid + tanh / element
        bytes_accessed=int((w_ih.size + w_hh.size) * wbytes
                           + (b_gi.size + b_hn.size) * 4
                           + 2 * L * Bp * P * 4       # hidden read + states write
                           + Bp * P * 4),             # x0
    )

    # Double-buffered footprint: 2x each streamed block + scratch + headroom.
    vmem_need = (2 * 2 * (P * 3 * P) * wbytes         # w_ih + w_hh blocks
                 + 2 * 2 * Bp * P * 4                 # h block + out block
                 + 2 * Bp * P * 4                     # x0
                 + 2 * (3 * P + P) * 4                # biases
                 + Bp * P * 4)                        # carried-activation scratch
    vmem_limit = min(64 * 1024 * 1024,
                     max(16 * 1024 * 1024, int(vmem_need * 1.5)))
    # TODO(synk): for very large hidden sizes (P >= ~1024 on v7x) add a K-tiled
    # inner grid axis over the weight rows so the pipeline stays 2-deep in 64 MiB.

    states_p = pl.pallas_call(
        kernel,
        out_shape=jax.ShapeDtypeStruct((L, Bp, P), jnp.float32),
        grid_spec=pltpu.PrefetchScalarGridSpec(
            num_scalar_prefetch=0,
            grid=(L,),
            in_specs=[
                pl.BlockSpec((Bp, P), lambda l: (0, 0)),             # x0 (fetched once)
                pl.BlockSpec((1, Bp, P), lambda l: (l, 0, 0)),       # hidden[l]
                pl.BlockSpec((1, P, 3 * P), lambda l: (l, 0, 0)),    # W_ih^T[l]
                pl.BlockSpec((1, P, 3 * P), lambda l: (l, 0, 0)),    # W_hh^T[l]
                pl.BlockSpec((1, 1, 3 * P), lambda l: (l, 0, 0)),    # b_gi[l]
                pl.BlockSpec((1, 1, P), lambda l: (l, 0, 0)),        # b_hn[l]
            ],
            out_specs=pl.BlockSpec((1, Bp, P), lambda l: (l, 0, 0)),
            scratch_shapes=[pltpu.VMEM((Bp, P), jnp.float32)],
        ),
        compiler_params=pltpu.CompilerParams(
            dimension_semantics=("arbitrary",),       # layer loop is sequential
            vmem_limit_bytes=vmem_limit),
        cost_estimate=cost,
    )(x0, h0, w_ih, w_hh, b_gi, b_hn)

    states = states_p[:, :B, :H].astype(inp.dtype)
    out = states[-1][None, ...]
    return out, states


def init_params(key, input_size, hidden_size, num_layers):
    """Deterministic PyTorch-style init: U(-1/sqrt(H), 1/sqrt(H))."""
    params = []
    bound = 1.0 / (hidden_size ** 0.5)
    in_sz = input_size
    for _ in range(num_layers):
        key, k1, k2, k3, k4 = jax.random.split(key, 5)
        w_ih = jax.random.uniform(k1, (3 * hidden_size, in_sz),
                                  minval=-bound, maxval=bound, dtype=jnp.float32)
        w_hh = jax.random.uniform(k2, (3 * hidden_size, hidden_size),
                                  minval=-bound, maxval=bound, dtype=jnp.float32)
        b_ih = jax.random.uniform(k3, (3 * hidden_size,),
                                  minval=-bound, maxval=bound, dtype=jnp.float32)
        b_hh = jax.random.uniform(k4, (3 * hidden_size,),
                                  minval=-bound, maxval=bound, dtype=jnp.float32)
        params.append((w_ih, w_hh, b_ih, b_hh))
        in_sz = hidden_size
    return params


if __name__ == "__main__":
    input_size = 16
    hidden_size = 32
    num_layers = 2
    batch = 2

    key = jax.random.PRNGKey(0)
    key, kx, kh = jax.random.split(key, 3)

    params = init_params(key, input_size, hidden_size, num_layers)

    x = jax.random.normal(kx, (1, batch, input_size), dtype=jnp.float32)
    h0 = jax.random.normal(kh, (num_layers, batch, hidden_size), dtype=jnp.float32)

    # Pure-JAX f32 reference of the StackedGRU math (PyTorch GRUCell, gates [r|z|n]).
    def ref_cell(x_, h_, w_ih, w_hh, b_ih, b_hh):
        H = h_.shape[1]
        gi = x_ @ w_ih.T + b_ih
        gh = h_ @ w_hh.T + b_hh
        r = jax.nn.sigmoid(gi[:, :H] + gh[:, :H])
        z = jax.nn.sigmoid(gi[:, H:2 * H] + gh[:, H:2 * H])
        n = jnp.tanh(gi[:, 2 * H:] + r * gh[:, 2 * H:])
        return (1.0 - z) * n + z * h_

    xr = x[0]
    ref_states = []
    for i, p in enumerate(params):
        xr = ref_cell(xr, h0[i], *p)
        ref_states.append(xr)
    ref_states = jnp.stack(ref_states, 0)

    # (a) Production path: bf16 weights / bf16 MXU operands, f32 accumulation.
    #     Loose tolerance accounts for bf16 quantization of weights+activations.
    prepared_bf16 = prepare_stacked_params(params, input_size, hidden_size,
                                           weight_dtype=jnp.bfloat16)
    out, states = stacked_gru_forward(prepared_bf16, x, h0)
    jax.block_until_ready((out, states))
    assert out.shape == (1, batch, hidden_size)
    assert states.shape == (num_layers, batch, hidden_size)
    assert jnp.allclose(states, ref_states, atol=2e-2, rtol=2e-2)
    assert jnp.allclose(out[0], ref_states[-1], atol=2e-2, rtol=2e-2)

    # (b) f32-weight parity path: bit-for-bit same math as the reference up to
    #     f32 accumulation order -> tight tolerance.
    prepared_f32 = prepare_stacked_params(params, input_size, hidden_size,
                                          weight_dtype=jnp.float32)
    out32, states32 = stacked_gru_forward(prepared_f32, x, h0)
    jax.block_until_ready((out32, states32))
    assert jnp.allclose(states32, ref_states, atol=1e-5, rtol=1e-5)
    assert jnp.allclose(out32[0], ref_states[-1], atol=1e-5, rtol=1e-5)

    print("KERNEL_OK")
</pallas_src>

<mosaic_0001>
module attributes {stable_mosaic.version = 11 : i64} {
  func.func @_stacked_gru_kernel(%arg0: i32, %arg1: memref<8x128xf32, #tpu.memory_space<vmem>>, %arg2: memref<1x8x128xf32, #tpu.memory_space<vmem>>, %arg3: memref<1x128x384xbf16, #tpu.memory_space<vmem>>, %arg4: memref<1x128x384xbf16, #tpu.memory_space<vmem>>, %arg5: memref<1x1x384xf32, #tpu.memory_space<vmem>>, %arg6: memref<1x1x128xf32, #tpu.memory_space<vmem>>, %arg7: memref<1x8x128xf32, #tpu.memory_space<vmem>>, %arg8: memref<8x128xf32, #tpu.memory_space<vmem>>) attributes {dimension_semantics = [#tpu.dimension_semantics<arbitrary>], iteration_bounds = array<i64: 2>, scalar_prefetch = 0 : i64, scratch_operands = 1 : i64, tpu.core_type = #tpu.core_type<tc>, window_params = [{pipeline_mode = #tpu.pipeline_mode<synchronous>, transform_indices = @transform_0, window_bounds = array<i64: 8, 128>}, {transform_indices = @transform_1, window_bounds = array<i64: 1, 8, 128>}, {transform_indices = @transform_2, window_bounds = array<i64: 1, 128, 384>}, {transform_indices = @transform_3, window_bounds = array<i64: 1, 128, 384>}, {transform_indices = @transform_4, window_bounds = array<i64: 1, 1, 384>}, {transform_indices = @transform_5, window_bounds = array<i64: 1, 1, 128>}, {transform_indices = @transform_6, window_bounds = array<i64: 1, 8, 128>}]} {
    %c0_i32 = arith.constant 0 : i32
    %0 = arith.cmpi eq, %arg0, %c0_i32 : i32
    %1 = arith.extui %0 : i1 to i32
    %c0_i32_0 = arith.constant 0 : i32
    %2 = arith.cmpi ne, %1, %c0_i32_0 : i32
    scf.if %2 {
      %c0_26 = arith.constant 0 : index
      %c0_27 = arith.constant 0 : index
      %52 = vector.load %arg1[%c0_26, %c0_27] : memref<8x128xf32, #tpu.memory_space<vmem>>, vector<8x128xf32>
      %c0_28 = arith.constant 0 : index
      %c0_29 = arith.constant 0 : index
      %53 = vector.load %arg8[%c0_28, %c0_29] : memref<8x128xf32, #tpu.memory_space<vmem>>, vector<8x128xf32>
      tpu.vector_store %arg8[%c0_28, %c0_29], %52 {strides = array<i32>} : memref<8x128xf32, #tpu.memory_space<vmem>>, vector<8x128xf32>,
    } else {
    }
    %c0 = arith.constant 0 : index
    %c0_1 = arith.constant 0 : index
    %c0_2 = arith.constant 0 : index
    %3 = vector.load %arg2[%c0, %c0_1, %c0_2] : memref<1x8x128xf32, #tpu.memory_space<vmem>>, vector<1x8x128xf32>
    %4 = vector.shape_cast %3 : vector<1x8x128xf32> to vector<8x128xf32>
    %c0_3 = arith.constant 0 : index
    %c0_4 = arith.constant 0 : index
    %5 = vector.load %arg8[%c0_3, %c0_4] : memref<8x128xf32, #tpu.memory_space<vmem>>, vector<8x128xf32>
    %6 = arith.truncf %5 : vector<8x128xf32> to vector<8x128xbf16>
    %7 = arith.truncf %4 : vector<8x128xf32> to vector<8x128xbf16>
    %c0_5 = arith.constant 0 : index
    %c0_6 = arith.constant 0 : index
    %c0_7 = arith.constant 0 : index
    %8 = vector.load %arg3[%c0_5, %c0_6, %c0_7] : memref<1x128x384xbf16, #tpu.memory_space<vmem>>, vector<1x128x384xbf16>
    %9 = vector.shape_cast %8 : vector<1x128x384xbf16> to vector<128x384xbf16>
    %cst = arith.constant dense<0.000000e+00> : vector<8x384xf32>
    %10 = tpu.matmul %6, %9, %cst {dimension_numbers = #tpu.dot_dimension_numbers<[1], [0], [0], [1], [0, 0, 1, 1], [], []>} : vector<8x128xbf16>, vector<128x384xbf16>, vector<8x384xf32> -> vector<8x384xf32>
    %c0_8 = arith.constant 0 : index
    %c0_9 = arith.constant 0 : index
    %c0_10 = arith.constant 0 : index
    %11 = vector.load %arg5[%c0_8, %c0_9, %c0_10] : memref<1x1x384xf32, #tpu.memory_space<vmem>>, vector<1x1x384xf32>
    %12 = vector.shape_cast %11 : vector<1x1x384xf32> to vector<1x384xf32>
    %13 = vector.broadcast %12 : vector<1x384xf32> to vector<8x384xf32>
    %14 = arith.addf %10, %13 : vector<8x384xf32>
    %c0_11 = arith.constant 0 : index
    %c0_12 = arith.constant 0 : index
    %c0_13 = arith.constant 0 : index
    %15 = vector.load %arg4[%c0_11, %c0_12, %c0_13] : memref<1x128x384xbf16, #tpu.memory_space<vmem>>, vector<1x128x384xbf16>
    %16 = vector.shape_cast %15 : vector<1x128x384xbf16> to vector<128x384xbf16>
    %cst_14 = arith.constant dense<0.000000e+00> : vector<8x384xf32>
    %17 = tpu.matmul %7, %16, %cst_14 {dimension_numbers = #tpu.dot_dimension_numbers<[1], [0], [0], [1], [0, 0, 1, 1], [], []>} : vector<8x128xbf16>, vector<128x384xbf16>, vector<8x384xf32> -> vector<8x384xf32>
    %18 = vector.extract_strided_slice %14 {offsets = [0, 0], sizes = [8, 128], strides = [1, 1]} : vector<8x384xf32> to vector<8x128xf32>
    %19 = vector.extract_strided_slice %14 {offsets = [0, 128], sizes = [8, 128], strides = [1, 1]} : vector<8x384xf32> to vector<8x128xf32>
    %20 = vector.extract_strided_slice %14 {offsets = [0, 256], sizes = [8, 128], strides = [1, 1]} : vector<8x384xf32> to vector<8x128xf32>
    %21 = vector.extract_strided_slice %17 {offsets = [0, 0], sizes = [8, 128], strides = [1, 1]} : vector<8x384xf32> to vector<8x128xf32>
    %22 = vector.extract_strided_slice %17 {offsets = [0, 128], sizes = [8, 128], strides = [1, 1]} : vector<8x384xf32> to vector<8x128xf32>
    %23 = vector.extract_strided_slice %17 {offsets = [0, 256], sizes = [8, 128], strides = [1, 1]} : vector<8x384xf32> to vector<8x128xf32>
    %24 = arith.addf %18, %21 : vector<8x128xf32>
    %25 = arith.negf %24 : vector<8x128xf32>
    %26 = math.exp %25 : vector<8x128xf32>
    %cst_15 = arith.constant 1.000000e+00 : f32
    %27 = vector.broadcast %cst_15 : f32 to vector<8x128xf32>
    %28 = arith.addf %27, %26 : vector<8x128xf32>
    %29 = arith.divf %27, %28 : vector<8x128xf32>
    %30 = arith.addf %19, %22 : vector<8x128xf32>
    %31 = arith.negf %30 : vector<8x128xf32>
    %32 = math.exp %31 : vector<8x128xf32>
    %cst_16 = arith.constant 1.000000e+00 : f32
    %33 = vector.broadcast %cst_16 : f32 to vector<8x128xf32>
    %34 = arith.addf %33, %32 : vector<8x128xf32>
    %35 = arith.divf %33, %34 : vector<8x128xf32>
    %c0_17 = arith.constant 0 : index
    %c0_18 = arith.constant 0 : index
    %c0_19 = arith.constant 0 : index
    %36 = vector.load %arg6[%c0_17, %c0_18, %c0_19] : memref<1x1x128xf32, #tpu.memory_space<vmem>>, vector<1x1x128xf32>
    %37 = vector.shape_cast %36 : vector<1x1x128xf32> to vector<1x128xf32>
    %38 = vector.broadcast %37 : vector<1x128xf32> to vector<8x128xf32>
    %39 = arith.addf %23, %38 : vector<8x128xf32>
    %40 = arith.mulf %29, %39 : vector<8x128xf32>
    %41 = arith.addf %20, %40 : vector<8x128xf32>
    %42 = math.tanh %41 : vector<8x128xf32>
    %cst_20 = arith.constant 1.000000e+00 : f32
    %43 = vector.broadcast %cst_20 : f32 to vector<8x128xf32>
    %44 = arith.subf %43, %35 : vector<8x128xf32>
    %45 = arith.mulf %44, %42 : vector<8x128xf32>
    %46 = arith.mulf %35, %4 : vector<8x128xf32>
    %47 = arith.addf %45, %46 : vector<8x128xf32>
    %c0_21 = arith.constant 0 : index
    %c0_22 = arith.constant 0 : index
    %c0_23 = arith.constant 0 : index
    %48 = vector.load %arg7[%c0_21, %c0_22, %c0_23] : memref<1x8x128xf32, #tpu.memory_space<vmem>>, vector<1x8x128xf32>
    %49 = vector.shape_cast %48 : vector<1x8x128xf32> to vector<8x128xf32>
    %50 = vector.shape_cast %47 : vector<8x128xf32> to vector<1x8x128xf32>
    tpu.vector_store %arg7[%c0_21, %c0_22, %c0_23], %50 {strides = array<i32>} : memref<1x8x128xf32, #tpu.memory_space<vmem>>, vector<1x8x128xf32>,
    %c0_24 = arith.constant 0 : index
    %c0_25 = arith.constant 0 : index
    %51 = vector.load %arg8[%c0_24, %c0_25] : memref<8x128xf32, #tpu.memory_space<vmem>>, vector<8x128xf32>
    tpu.vector_store %arg8[%c0_24, %c0_25], %47 {strides = array<i32>} : memref<8x128xf32, #tpu.memory_space<vmem>>, vector<8x128xf32>,
    return
  }
  func.func @transform_0(%arg0: i32) -> (i32, i32) {
    %c0_i32 = arith.constant 0 : i32
    %c0_i32_0 = arith.constant 0 : i32
    %c0_i32_1 = arith.constant 0 : i32
    return %c0_i32, %c0_i32_0 : i32, i32
  }
  func.func @transform_1(%arg0: i32) -> (i32, i32, i32) {
    %c0_i32 = arith.constant 0 : i32
    %c0_i32_0 = arith.constant 0 : i32
    %c0_i32_1 = arith.constant 0 : i32
    return %arg0, %c0_i32, %c0_i32_0 : i32, i32, i32
  }
  func.func @transform_2(%arg0: i32) -> (i32, i32, i32) {
    %c0_i32 = arith.constant 0 : i32
    %c0_i32_0 = arith.constant 0 : i32
    %c0_i32_1 = arith.constant 0 : i32
    return %arg0, %c0_i32, %c0_i32_0 : i32, i32, i32
  }
  func.func @transform_3(%arg0: i32) -> (i32, i32, i32) {
    %c0_i32 = arith.constant 0 : i32
    %c0_i32_0 = arith.constant 0 : i32
    %c0_i32_1 = arith.constant 0 : i32
    return %arg0, %c0_i32, %c0_i32_0 : i32, i32, i32
  }
  func.func @transform_4(%arg0: i32) -> (i32, i32, i32) {
    %c0_i32 = arith.constant 0 : i32
    %c0_i32_0 = arith.constant 0 : i32
    %c0_i32_1 = arith.constant 0 : i32
    return %arg0, %c0_i32, %c0_i32_0 : i32, i32, i32
  }
  func.func @transform_5(%arg0: i32) -> (i32, i32, i32) {
    %c0_i32 = arith.constant 0 : i32
    %c0_i32_0 = arith.constant 0 : i32
    %c0_i32_1 = arith.constant 0 : i32
    return %arg0, %c0_i32, %c0_i32_0 : i32, i32, i32
  }
  func.func @transform_6(%arg0: i32) -> (i32, i32, i32) {
    %c0_i32 = arith.constant 0 : i32
    %c0_i32_0 = arith.constant 0 : i32
    %c0_i32_1 = arith.constant 0 : i32
    return %arg0, %c0_i32, %c0_i32_0 : i32, i32, i32
  }
}

</mosaic_0001>

<bundles_post_ra>
// kernel: tpu_custom_call.1
= control target key start
LH: loop header
LB: loop body
LE: loop exit
PB: predicated region body
PF: predicated region fallthrough
CT: control target
= control target key end

     0   :  { %s2007_s0 = inlined_call_operand.hbm [shape: f32[8,128], index: 0, kind: input, shape index: {}]   ;;  %s2008_s1 = inlined_call_operand.hbm [shape: f32[2,8,128], index: 1, kind: input, shape index: {}]   ;;  %s2009_s2 = inlined_call_operand.hbm [shape: bf16[2,128,384], index: 2, kind: input, shape index: {}]   ;;  %s2010_s3 = inlined_call_operand.hbm [shape: bf16[2,128,384], index: 3, kind: input, shape index: {}]   ;;  %s2011_s4 = inlined_call_operand.vmem [shape: f32[2,1,384], index: 4, kind: input, shape index: {}]   ;;  %s2012_s5 = inlined_call_operand.vmem [shape: f32[2,1,128], index: 5, kind: input, shape index: {}]   ;;  %s2013_s6 = inlined_call_operand.hbm [shape: f32[2,8,128], index: 6, kind: output, shape index: {}]  }
   0x1   :  { %2030 = sst [smem:[#allocation21_spill]] %s2008_s1 }
   0x2   :  { %2031 = sst [smem:[#allocation22_spill]] %s2009_s2 }
   0x3   :  { %11 = vsyncpa [#allocation4], 0 }
   0x4   :  { %12 = vsyncpa [#allocation7], 0 }
   0x5   :  { %14 = vsyncpa [#allocation7 + $0x1], 0 }
   0x6   :  { %15 = vsyncpa [#allocation10], 0 }
   0x7   :  { %17 = vsyncpa [#allocation10 + $0x1], 0 }
   0x8   :  { %18 = vsyncpa [#allocation5], 0 }
   0x9   :  { %20 = vsyncpa [#allocation5 + $0x1], 0  ;;  %s1612_s21 = smov 0   ;;  %s1614_s22 = smov 0  }
   0xa   :  { %s1616_s23 = smov 0   ;;  %s1618_s24 = smov 0  }
   0xb LB: > { %2032 = sst [smem:[#allocation16_spill]] %s1553_s21  ;;  %s1633_s25 = sadd.s32 1, %s1565_s24   ;;  %s1565_s24 = sphi %s1618_s24, %s2062_s24   ;;  %s1561_s23 = sphi %s1616_s23, %s2064_s23   ;;  %s1557_s22 = sphi %s1614_s22, %s2066_s22   ;;  %s1553_s21 = sphi %s1612_s21, %s2065_s21  }
   0xc   : > { %2033 = sst [smem:[#allocation17_spill]] %s1561_s23  ;;  %s54_s26 = sadd.s32 1, %s1561_s23 }
   0xd   : > { %2034 = sst [smem:[#allocation18_spill]] %s1633_s25  ;;  %s51_s27 = ssub.s32 %s1565_s24, %s1633_s25 }
   0xe   : > { %p2014_p0 = scmp.ne.s32.totalorder %s1561_s23, %s1557_s22  ;;  %p52_p1 = scmp.eq.s32.totalorder %s51_s27, 0 }
   0xf   : > { %p62_p2 = scmp.eq.s32.totalorder %s1565_s24, 0  ;;  %p1258_p4 = scmp.lt.s32.totalorder %s1565_s24, 2 }
  0x10   : > { %s1644_s28 = scalar_select %p52_p1, %s1561_s23, %s54_s26  }
  0x11   : > { %p63_p5 = por %p62_p2, %p2014_p0  ;;  %s232_s29 = sand.u32 1, %s1565_s24  }
  0x12   : > { %2035 = sst [smem:[#allocation19_spill]] %s1644_s28  ;;  %s1651_s30 = sand.u32 1, %s1561_s23  }
  0x13   : > { %s1093_s7 = sshll.u32 %s1651_s30, 3  ;;  %s1094_s8 = sshll.u32 %s1565_s24, 7 }
  0x14   : > { %s2036_s1 = sld [smem:[#allocation21_spill]]  ;;  %s236_s12 = scalar_lea.vmem [#allocation6], %s1093_s7 }
  0x15   : > { %s243_s13 = sshll.u32 %s236_s12, 4  ;;  %p1660_p6 = pnand %p1258_p4, %p63_p5  ;;  %s1664_s13 = int_to_ptr.vmem [resolvable:$true] %s243_s13 }
  0x16   : > { %s2015_s15 = smul.u32 192, %s1651_s30  ;;  %s1667_s16 = scalar_lea.sflag [#allocation7], %s232_s29 }
  0x17   : > { %s2037_s14 = scalar_select %p1660_p6, 1, 0 }
  0x18   : > { %p1673_p8 = pneg %p1660_p6 }
  0x1a   : > { %s1658_s11 = scalar_lea.hbm %s2036_s1, %s1094_s8  ;;  %s1378_s26 = scalar_lea.hbm %s2036_s1, 256 }
  0x1b   : > { %s1373_s17 = scalar_lea.hbm %s1658_s11, 128  ;;  %p1379_p11 = scmp.lt.u32.totalorder %s1658_s11, %s2036_s1 }
  0x1c   : > { %p1374_p7 = scmp.ne.s32.totalorder %s1658_s11, %s1373_s17  ;;  %p1380_p12 = scmp.lt.u32.totalorder %s1378_s26, %s1373_s17 }
  0x1d   : > { %s2038_s18 = scalar_select %p1673_p8, 1, 0 }
  0x1e   : > { %p1376_p9 = pnand %p1673_p8, %p1374_p7  ;;  %p1381_p13 = por %p1380_p12, %p1379_p11 }
  0x1f   : > { %p1382_p1 = scmp.lt.u32.totalorder %s1373_s17, %s1658_s11 }
  0x20   : > { %p1377_p10 = pneg %p1376_p9 }
  0x21   : > { %p1383_p2 = por %p1382_p1, %p1381_p13 }
  0x23   : > { %p1384_p4 = pnand %p1383_p2, %p1377_p10 }
  0x25   : > { %1387 = shalt.err (!%p1384_p4)
}
  0x26   : > { %s1388_s29 = scalar_lea.vmem %s1664_s13, 128  ;;  %s1567_s8 = smov [#allocation6]  }
  0x27   : > { %p1389_p5 = scmp.ne.s32.totalorder %s1664_s13, %s1388_s29  ;;  %s1393_s9 = sshll.u32 %s1567_s8, 4  ;;  %s1394_s9 = int_to_ptr.vmem [resolvable:$false] %s1393_s9 }
  0x28   : > { %s1395_s10 = scalar_lea.vmem %s1394_s9, 256  ;;  %p1396_p3 = scmp.lt.s32.totalorder %s1664_s13, %s1394_s9 }
  0x29   : > { %p1391_p7 = pnand %p1389_p5, %p1673_p8  ;;  %p1397_p0 = scmp.lt.s32.totalorder %s1395_s10, %s1388_s29 }
  0x2b   : > { %p1392_p9 = pneg %p1391_p7  ;;  %p1398_p11 = por %p1397_p0, %p1396_p3 }
  0x2d   : > { %p1399_p12 = pnand %p1398_p11, %p1392_p9 }
  0x2f   : > { %1402 = shalt.err (!%p1399_p12)
}
  0x30   : > { %1246 = dma.hbm_to_vmem [thread:$0]  (!%p1660_p6), %s1658_s11, 128, %s1664_s13, %s1667_s16  }
  0x31   : > { %s254_s12 = scalar_lea.vmem [#allocation8], %s2015_s15  ;;  %s1700_s19 = sadd.s32 4294967295, %s1565_s24  }
  0x32   : > { %s261_s17 = sshll.u32 %s254_s12, 4  ;;  %s1089_s20 = sadd.s32 4294967294, %s1565_s24   ;;  %s1702_s17 = int_to_ptr.vmem [resolvable:$true] %s261_s17 }
  0x33   : > { %p67_p0 = scmp.ne.s32.totalorder %s1557_s22, %s1553_s21  ;;  %p2018_p3 = scmp.eq.s32.totalorder %s1700_s19, 0 }
  0x34   : > { %p195_p10 = scmp.eq.s32.totalorder %s1700_s19, 1  ;;  %p201_p13 = scmp.eq.s32.totalorder %s1089_s20, 1 }
  0x35   : > { %p1711_p1 = por %p2018_p3, %p67_p0  ;;  %p1090_p2 = scmp.ge.s32.totalorder %s1565_s24, 1 }
  0x36   : > { %p2040_p4 = scmp.ne.s32.totalorder %s1561_s23, %s1557_s22  ;;  %p1723_p7 = por %p201_p13, %p67_p0 }
  0x37   : > { %s2039_s11 = scalar_select %p1711_p1, 1, 0 }
  0x38   : > { %p1719_p5 = por %p195_p10, %p2040_p4  ;;  %p208_p9 = scmp.lt.s32.totalorder %s1565_s24, 3 }
  0x39   : > { %s2042_s26 = scalar_select %p1723_p7, 1, 0 }
  0x3a   : > { %s2041_s13 = scalar_select %p1719_p5, 1, 0 }
  0x3b   : > { %2043 = sst [smem:[#allocation20_spill]] %s2042_s26  ;;  %s2016_s27 = smul.u32 3072, %s1565_s24 }
  0x3c   : > { %p1730_p12 = pnand %p1090_p2, %p208_p9  ;;  %s1568_s29 = smov [#allocation3]  }
  0x3d   : > { %s221_s8 = sshll.u32 %s1568_s29, 4  ;;  %s2045_s2 = sld [smem:[#allocation22_spill]]  ;;  %s1734_s8 = int_to_ptr.vmem [resolvable:$true] %s221_s8 }
  0x3e   : > { %s2044_s7 = scalar_select %p1730_p12, 1, 0 }
  0x3f   : > { %p1239_p0 = pneg %p1730_p12 }
  0x41   : > { %p1747_p10 = pnand %p1239_p0, %p2018_p3 }
  0x43   : > { %s1741_s12 = scalar_lea.hbm %s2045_s2, %s2016_s27  ;;  %s1408_s10 = scalar_lea.hbm %s2045_s2, 6144 }
  0x44   : > { %s2046_s20 = scalar_select %p1747_p10, 1, 0 }
  0x45   : > { %s1403_s29 = scalar_lea.hbm %s1741_s12, 3072  ;;  %p1409_p9 = scmp.lt.u32.totalorder %s1741_s12, %s2045_s2 }
  0x46   : > { %p1404_p13 = scmp.ne.s32.totalorder %s1741_s12, %s1403_s29  ;;  %p1410_p11 = scmp.lt.u32.totalorder %s1408_s10, %s1403_s29 }
  0x47   : > { %p1412_p5 = scmp.lt.u32.totalorder %s1403_s29, %s1741_s12 }
  0x48   : > { %p1406_p2 = pnand %p1404_p13, %p1673_p8  ;;  %p1411_p7 = por %p1410_p11, %p1409_p9 }
  0x4a   : > { %p1407_p4 = pneg %p1406_p2  ;;  %p1413_p0 = por %p1412_p5, %p1411_p7 }
  0x4c   : > { %p1414_p3 = pnand %p1413_p0, %p1407_p4 }
  0x4e   : > { %1417 = shalt.err (!%p1414_p3)
}
  0x4f   : > { %s1418_s28 = scalar_lea.vmem %s1702_s17, 3072  ;;  %s1569_s15 = smov [#allocation8]  }
  0x50   : > { %p1419_p13 = scmp.ne.s32.totalorder %s1702_s17, %s1418_s28  ;;  %s1423_s9 = sshll.u32 %s1569_s15, 4  ;;  %s1424_s9 = int_to_ptr.vmem [resolvable:$false] %s1423_s9 }
  0x51   : > { %s1425_s1 = scalar_lea.vmem %s1424_s9, 6144  ;;  %p1426_p12 = scmp.lt.s32.totalorder %s1702_s17, %s1424_s9 }
  0x52   : > { %p1421_p2 = pnand %p1419_p13, %p1673_p8  ;;  %p1427_p10 = scmp.lt.s32.totalorder %s1425_s1, %s1418_s28 }
  0x54   : > { %p1422_p1 = pneg %p1421_p2  ;;  %p1428_p11 = por %p1427_p10, %p1426_p12 }
  0x56   : > { %p1429_p9 = pnand %p1428_p11, %p1422_p1 }
  0x58   : > { %1432 = shalt.err (!%p1429_p9)
}
  0x59   : > { %s1570_s27 = smov 192   ;;  %s1571_s29 = smov 12  }
  0x5a   : > { %1249 = dma.hbm_to_vmem [thread:$0]  (!%p1660_p6), %s1741_s12, 3072, %s1702_s17, %s1667_s16, %s1570_s27, %s1570_s27, %s1571_s29  }
  0x5b   : > { %s2047_s10 = smul.u32 3072, %s1565_s24  ;;  %s1433_s23 = scalar_lea.hbm %s2007_s0, 128 }
  0x5c   : > { %p1434_p3 = scmp.ne.s32.totalorder %s2007_s0, %s1433_s23  ;;  %p2048_p1 = scmp.ne.s32.totalorder %s2046_s20, 0 }
  0x5d   : > { %s1781_s28 = scalar_lea.hbm %s2010_s3, %s2047_s10  ;;  %p1440_p10 = scmp.lt.u32.totalorder %s1433_s23, %s2007_s0 }
  0x5e   : > { %p1435_p5 = pneg %p2048_p1 }
  0x60   : > { %p1436_p7 = pnand %p1435_p5, %p1434_p3 }
  0x62   : > { %p1437_p12 = pneg %p1436_p7 }
  0x64   : > { %p1442_p4 = pnand %p1440_p10, %p1437_p12 }
  0x66   : > { %1445 = shalt.err (!%p1442_p4)
}
  0x67   : > { %s1446_s17 = scalar_lea.vmem %s1734_s8, 128  ;;  %p1454_p11 = scmp.lt.s32.totalorder %s1734_s8, %s1734_s8 }
  0x68   : > { %p1447_p0 = scmp.ne.s32.totalorder %s1734_s8, %s1446_s17  ;;  %p1455_p9 = scmp.lt.s32.totalorder %s1446_s17, %s1446_s17 }
  0x6a   : > { %p1449_p13 = pnand %p1447_p0, %p1435_p5  ;;  %p1456_p6 = por %p1455_p9, %p1454_p11 }
  0x6c   : > { %p1450_p2 = pneg %p1449_p13 }
  0x6e   : > { %p1457_p8 = pnand %p1456_p6, %p1450_p2 }
  0x70   : > { %1460 = shalt.err (!%p1457_p8)
}
  0x71   : > { %1242 = dma.hbm_to_vmem [thread:$0]  (!%p2048_p1), %s2007_s0, 128, %s1734_s8, [#allocation4]  }
  0x72   : > { %s2049_s23 = smul.u32 192, %s1651_s30  ;;  %s272_s12 = scalar_lea.sflag [#allocation10], %s1651_s30 }
  0x73   : > { %s1461_s10 = scalar_lea.hbm %s1781_s28, 3072  ;;  %p2050_p8 = scmp.ne.s32.totalorder %s2038_s18, 0 }
  0x74   : > { %s275_s25 = scalar_lea.vmem [#allocation9], %s2049_s23  ;;  %p1462_p6 = scmp.ne.s32.totalorder %s1781_s28, %s1461_s10 }
  0x75   : > { %s282_s26 = sshll.u32 %s275_s25, 4  ;;  %s1466_s9 = scalar_lea.hbm %s2010_s3, 6144  ;;  %s1806_s26 = int_to_ptr.vmem [resolvable:$true] %s282_s26 }
  0x76   : > { %p1464_p3 = pnand %p1462_p6, %p2050_p8  ;;  %p1467_p7 = scmp.lt.u32.totalorder %s1781_s28, %s2010_s3 }
  0x77   : > { %p1468_p1 = scmp.lt.u32.totalorder %s1466_s9, %s1461_s10  ;;  %p1470_p10 = scmp.lt.u32.totalorder %s1461_s10, %s1781_s28 }
  0x78   : > { %p1465_p5 = pneg %p1464_p3 }
  0x79   : > { %p1469_p12 = por %p1468_p1, %p1467_p7 }
  0x7b   : > { %p1471_p4 = por %p1470_p10, %p1469_p12 }
  0x7d   : > { %p1472_p0 = pnand %p1471_p4, %p1465_p5 }
  0x7f   : > { %1475 = shalt.err (!%p1472_p0)
}
  0x80   : > { %s1476_s8 = scalar_lea.vmem %s1806_s26, 3072  ;;  %s1572_s17 = smov [#allocation9]  }
  0x81   : > { %p1477_p13 = scmp.ne.s32.totalorder %s1806_s26, %s1476_s8  ;;  %s1481_s2 = sshll.u32 %s1572_s17, 4  ;;  %s1482_s2 = int_to_ptr.vmem [resolvable:$false] %s1481_s2 }
  0x82   : > { %s1483_s21 = scalar_lea.vmem %s1482_s2, 6144  ;;  %p1484_p9 = scmp.lt.s32.totalorder %s1806_s26, %s1482_s2 }
  0x83   : > { %p1479_p2 = pnand %p1477_p13, %p2050_p8  ;;  %p1485_p6 = scmp.lt.s32.totalorder %s1483_s21, %s1476_s8 }
  0x85   : > { %p1480_p11 = pneg %p1479_p2  ;;  %p1486_p3 = por %p1485_p6, %p1484_p9 }
  0x87   : > { %p1487_p7 = pnand %p1486_p3, %p1480_p11 }
  0x89   : > { %1490 = shalt.err (!%p1487_p7)
}
  0x8a   : > { %p2051_p5 = scmp.ne.s32.totalorder %s2037_s14, 0  ;;  %p2052_p8 = scmp.ne.s32.totalorder %s2044_s7, 0 }
  0x8b   : > { %p2053_p1 = scmp.eq.s32.totalorder (!%p2052_p8), %s1700_s19, 0 }
  0x8c   : > { %1252 = dma.hbm_to_vmem [thread:$0]  (!%p2051_p5), %s1781_s28, 3072, %s1806_s26, %s272_s12, %s1570_s27, %s1570_s27, %s1571_s29  }
  0x8d   : > { %307 = sbr.rel (%p2052_p8) target bundleno = 507 (0x1fb), region = 44 }
  0x94   : > { %1536 = dma.done.wait (%p2053_p1), [#allocation4], 128   ;;  %p2054_p12 = pmov %p2053_p1 }
  0x95   : > { %s313_s14 = sand.u32 1, %s1700_s19   ;;  %s1843_s18 = sand.u32 1, %s1557_s22  }
  0x96   : > { %1538 = vsyncadd (%p2054_p12), [#allocation4], 4294967168  ;;  %s1099_s30 = sshll.u32 %s1843_s18, 3  ;;  %s314_s23 = scalar_lea.sflag [#allocation7], %s313_s14 }
  0x97   : > { %s1846_s25 = scalar_lea.vmem [#allocation6], %s1099_s30  ;;  %p2055_p10 = scmp.ne.s32.totalorder %s2039_s11, 0 }
  0x99   : > { %1540 = dma.done.wait (%p2055_p10), %s314_s23, 3200  }
  0x9a   : > { %1542 = vsyncadd (%p2055_p10), %s314_s23, 4294964096  ;;  %s1225_s7 = smul.u32 192, %s1843_s18  ;;  %s332_s29 = scalar_lea.sflag [#allocation10], %s1843_s18 }
  0x9c   : > { %s1853_s27 = scalar_lea.vmem [#allocation8], %s1225_s7  ;;  %s1856_s28 = scalar_lea.vmem [#allocation9], %s1225_s7 }
  0x9d   : > { %1544 = dma.done.wait (%p2055_p10), %s332_s29, 3072  }
  0x9e   : > { %1546 = vsyncadd (%p2055_p10), %s332_s29, 4294964224  ;;  %p381_p4 = scmp.lt.s32.totalorder %s1700_s19, 1  ;;  %s1876_s8 = scalar_lea.vmem [#allocation11], %s1099_s30 }
  0x9f   : > { %p2056_p0 = scmp.ne.s32.totalorder %s1700_s19, 0 }
  0xa0   : > { %s1864_s26 = scalar_select %p381_p4, %s1700_s19, 1 }
  0xa1   : > { %392 = sbr.rel (%p2056_p0) target bundleno = 168 (0xa8), region = 64  ;;  %v393_v0 = vld [vmem:[#allocation3] sm:$0xff] (!%p2056_p0) }
  0xa2   : > { %s1226_s12 = smul.u32 3, %s1864_s26  ;;  %s387_s15 = scalar_lea.vmem %s2012_s5, %s1864_s26  ;;  %394 = vst [vmem:[#allocation2] sm:$0xff] (!%p2056_p0), %v393_v0 }
  0xa4   : > { %s1874_s16 = scalar_lea.vmem %s2011_s4, %s1226_s12 }
  0xa8 PF: > { %v1299_v1 = vld [vmem:[%s1853_s27 + $0x4] ss:$12 sps:$4 sm:$0xff]   ;;  %v1301_v2 = vld [vmem:[%s1853_s27] ss:$12 sps:$4 sm:$0xff]   ;;  %v1573_v3 = vmov 0.0   ;;  %v1574_v4 = vmov 0   ;;  %v433_v59 = vlaneseq }
  0xa9   : > { %1175 = vmatprep.subr.bf16.mxu1 %v1573_v3  ;;  %608 = vmatprep.mubr.bf16.mxu0 %v1574_v4  ;;  %v1302_v5 = vld [vmem:[%s1853_s27 + $0x1c] ss:$12 sps:$4 sm:$0xff]   ;;  %vm1575_vm0 = vmmov 0   ;;  %v1304_v6 = vld [vmem:[%s1853_s27 + $0x18] ss:$12 sps:$4 sm:$0xff]   ;;  %s1154_s2 = sshll.u32 %s1700_s19, 7 }
  0xaa   : > { %576 = vmatprep.subr.bf16.mxu0 %v1299_v1  ;;  %1191 = vmatprep.mubr.msk.bf16.mxu1 %vm1575_vm0, %v1573_v3  ;;  %v1305_v7 = vld [vmem:[%s1853_s27 + $0x34] ss:$12 sps:$4 sm:$0xff]   ;;  %v1307_v8 = vld [vmem:[%s1853_s27 + $0x30] ss:$12 sps:$4 sm:$0xff]   ;;  %v1308_v9 = vld [vmem:[%s1853_s27 + $0x4c] ss:$12 sps:$4 sm:$0xff]   ;;  %s1962_s23 = scalar_lea.hbm %s2013_s6, %s1154_s2 }
  0xab   : > { %577 = vmatpush1.bf16.msra.mxu0 %v1301_v2  ;;  %v1319_v10 = vld [vmem:[%s1853_s27 + $0x8] ss:$12 sps:$4 sm:$0xff]   ;;  %v1311_v12 = vld [vmem:[%s1853_s27 + $0x64] ss:$12 sps:$4 sm:$0xff]   ;;  %v1323_v13 = vld [vmem:[%s1853_s27 + $0x20] ss:$12 sps:$4 sm:$0xff]  }
  0xac   : > { %578 = vmatprep.subr.bf16.mxu0 %v1302_v5  ;;  %v1310_v11 = vld [vmem:[%s1853_s27 + $0x48] ss:$12 sps:$4 sm:$0xff]   ;;  %1176 = vmatpush3.bf16.msra.mxu1 %v1319_v10  ;;  %v1313_v14 = vld [vmem:[%s1853_s27 + $0x60] ss:$12 sps:$4 sm:$0xff]   ;;  %v1325_v15 = vld [vmem:[%s1853_s27 + $0x38] ss:$12 sps:$4 sm:$0xff]  }
  0xad   : > { %1177 = vmatprep.subr.bf16.mxu1 %v1573_v3  ;;  %v1314_v16 = vld [vmem:[%s1853_s27 + $0x7c] ss:$12 sps:$4 sm:$0xff]   ;;  %v1316_v17 = vld [vmem:[%s1853_s27 + $0x78] ss:$12 sps:$4 sm:$0xff]   ;;  %v1317_v19 = vld [vmem:[%s1853_s27 + $0x94] ss:$12 sps:$4 sm:$0xff]  }
  0xae   : > { %v1329_v18 = vld [vmem:[%s1853_s27 + $0x50] ss:$12 sps:$4 sm:$0xff]   ;;  %v1333_v21 = vld [vmem:[%s1853_s27 + $0x68] ss:$12 sps:$4 sm:$0xff]   ;;  %v1321_v22 = vld [vmem:[%s1853_s27 + $0xac] ss:$12 sps:$4 sm:$0xff]  }
  0xaf   : > { %579 = vmatpush1.bf16.msra.mxu0 %v1304_v6  ;;  %v1320_v20 = vld [vmem:[%s1853_s27 + $0x90] ss:$12 sps:$4 sm:$0xff]   ;;  %v1324_v23 = vld [vmem:[%s1853_s27 + $0xa8] ss:$12 sps:$4 sm:$0xff]   ;;  %v396_v24 = vld [vmem:[#allocation2] sm:$0xff]  ;;  %v434_v60 = vshrl.u32 %v433_v59, 7 }
  0xb0   : > { %580 = vmatprep.subr.bf16.mxu0 %v1305_v7  ;;  %1178 = vmatpush3.bf16.msra.mxu1 %v1323_v13  ;;  %v1337_v25 = vld [vmem:[%s1853_s27 + $0x80] ss:$12 sps:$4 sm:$0xff]   ;;  %v1328_v26 = vld [vmem:[%s1856_s28 + $0x4] ss:$12 sps:$4 sm:$0xff]   ;;  %v397_v27 = vpack.c.bf16 %v396_v24, %v396_v24  ;;  %v1332_v30 = vld [vmem:[%s1856_s28 + $0x1c] ss:$12 sps:$4 sm:$0xff]  }
  0xb1   : > { %1179 = vmatprep.subr.bf16.mxu1 %v1573_v3  ;;  %v1326_v28 = vld [vmem:[%s1856_s28] ss:$12 sps:$4 sm:$0xff]   ;;  %v1341_v29 = vld [vmem:[%s1853_s27 + $0x98] ss:$12 sps:$4 sm:$0xff]   ;;  %v1345_v32 = vld [vmem:[%s1853_s27 + $0xb0] ss:$12 sps:$4 sm:$0xff]  }
  0xb2   : > { %v1330_v31 = vld [vmem:[%s1856_s28 + $0x18] ss:$12 sps:$4 sm:$0xff]   ;;  %v1336_v33 = vld [vmem:[%s1856_s28 + $0x34] ss:$12 sps:$4 sm:$0xff]   ;;  %v1334_v34 = vld [vmem:[%s1856_s28 + $0x30] ss:$12 sps:$4 sm:$0xff]  }
  0xb3   : > { %581 = vmatpush1.bf16.msra.mxu0 %v1307_v8  ;;  %v1352_v35 = vld [vmem:[%s1856_s28 + $0x8] ss:$12 sps:$4 sm:$0xff]   ;;  %v1340_v36 = vld [vmem:[%s1856_s28 + $0x4c] ss:$12 sps:$4 sm:$0xff]   ;;  %v1344_v39 = vld [vmem:[%s1856_s28 + $0x64] ss:$12 sps:$4 sm:$0xff]  }
  0xb4   : > { %582 = vmatprep.subr.bf16.mxu0 %v1308_v9  ;;  %1180 = vmatpush3.bf16.msra.mxu1 %v1325_v15  ;;  %v1338_v37 = vld [vmem:[%s1856_s28 + $0x48] ss:$12 sps:$4 sm:$0xff]   ;;  %v1356_v38 = vld [vmem:[%s1856_s28 + $0x20] ss:$12 sps:$4 sm:$0xff]   ;;  %v1357_v41 = vld [vmem:[%s1856_s28 + $0x38] ss:$12 sps:$4 sm:$0xff]  }
  0xb5   : > { %1181 = vmatprep.subr.bf16.mxu1 %v1573_v3  ;;  %v1342_v40 = vld [vmem:[%s1856_s28 + $0x60] ss:$12 sps:$4 sm:$0xff]   ;;  %v1348_v42 = vld [vmem:[%s1856_s28 + $0x7c] ss:$12 sps:$4 sm:$0xff]   ;;  %v1346_v43 = vld [vmem:[%s1856_s28 + $0x78] ss:$12 sps:$4 sm:$0xff]  }
  0xb6   : > { %v1358_v44 = vld [vmem:[%s1856_s28 + $0x50] ss:$12 sps:$4 sm:$0xff]   ;;  %v1351_v45 = vld [vmem:[%s1856_s28 + $0x94] ss:$12 sps:$4 sm:$0xff]   ;;  %v1355_v48 = vld [vmem:[%s1856_s28 + $0xac] ss:$12 sps:$4 sm:$0xff]  }
  0xb7   : > { %583 = vmatpush1.bf16.msra.mxu0 %v1310_v11  ;;  %v1349_v46 = vld [vmem:[%s1856_s28 + $0x90] ss:$12 sps:$4 sm:$0xff]   ;;  %v1359_v47 = vld [vmem:[%s1856_s28 + $0x68] ss:$12 sps:$4 sm:$0xff]   ;;  %v1360_v51 = vld [vmem:[%s1856_s28 + $0x80] ss:$12 sps:$4 sm:$0xff]  }
  0xb8   : > { %584 = vmatprep.subr.bf16.mxu0 %v1311_v12  ;;  %1182 = vmatpush3.bf16.msra.mxu1 %v1329_v18  ;;  %v1353_v49 = vld [vmem:[%s1856_s28 + $0xa8] ss:$12 sps:$4 sm:$0xff]   ;;  %v1361_v53 = vld [vmem:[%s1856_s28 + $0x98] ss:$12 sps:$4 sm:$0xff]   ;;  %v1362_v54 = vld [vmem:[%s1856_s28 + $0xb0] ss:$12 sps:$4 sm:$0xff]  }
  0xb9   : > { %1183 = vmatprep.subr.bf16.mxu1 %v1573_v3  ;;  %v395_v50 = vld [vmem:[%s1846_s25] sm:$0xff]  ;;  %v435_v61 = vsub.s32 0, %v434_v60  ;;  %v431_v62 = vld [vmem:[%s1874_s16] sm:$0x7]  ;;  %v439_v63 = vsub.s32 1, %v434_v60  ;;  %s943_s21 = sshll.u32 %s1876_s8, 4  ;;  %s1964_s21 = int_to_ptr.vmem [resolvable:$true] %s943_s21 }
  0xba   : > { %v398_v52 = vpack.c.bf16 %v395_v50, %v395_v50  ;;  %v1152_v18 = vld [vmem:[%s387_s15] ss:$0 sm:$0xff]  ;;  %s930_s25 = scalar_lea.sflag [#allocation5], %s1843_s18  ;;  %s1491_s7 = scalar_lea.vmem %s1964_s21, 128 }
  0xbb   : > { %585 = vmatpush1.bf16.msra.mxu0 %v1313_v14  ;;  %v436_v0 = vrot.slane %v431_v62, %v435_v61  ;;  %v440_v2 = vrot.slane %v431_v62, %v439_v63  ;;  %p1492_p13 = scmp.ne.s32.totalorder %s1964_s21, %s1491_s7  ;;  %p2057_p2 = scmp.ne.s32.totalorder %s2041_s13, 0 }
  0xbc   : > { %586 = vmatprep.subr.bf16.mxu0 %v1314_v16  ;;  %1184 = vmatpush3.bf16.msra.mxu1 %v1333_v21  ;;  %v443_v16 = vsub.s32 2, %v434_v60  ;;  %s1576_s19 = smov [#allocation11]  }
  0xbd   : > { %1185 = vmatprep.subr.bf16.mxu1 %v1573_v3  ;;  %p1493_p11 = pnand %p1492_p13, %p2057_p2  ;;  %s1495_s27 = sshll.u32 %s1576_s19, 4  ;;  %s1496_s27 = int_to_ptr.vmem [resolvable:$false] %s1495_s27 }
  0xbe   : > { %s1497_s29 = scalar_lea.vmem %s1496_s27, 256  ;;  %p1498_p6 = scmp.lt.s32.totalorder %s1964_s21, %s1496_s27 }
  0xbf   : > { %587 = vmatpush1.bf16.msra.mxu0 %v1316_v17  ;;  %p1494_p9 = pneg %p1493_p11  ;;  %p1499_p3 = scmp.lt.s32.totalorder %s1497_s29, %s1491_s7 }
  0xc0   : > { %588 = vmatprep.subr.bf16.mxu0 %v1317_v19  ;;  %1186 = vmatpush3.bf16.msra.mxu1 %v1337_v25  ;;  %v444_v19 = vrot.slane %v431_v62, %v443_v16 }
  0xc1   : > { %1187 = vmatprep.subr.bf16.mxu1 %v1573_v3  ;;  %p1500_p7 = por %p1499_p3, %p1498_p6 }
  0xc3   : > { %589 = vmatpush1.bf16.msra.mxu0 %v1320_v20  ;;  %p1501_p5 = pnand %p1500_p7, %p1494_p9 }
  0xc4   : > { %590 = vmatprep.subr.bf16.mxu0 %v1321_v22  ;;  %1188 = vmatpush3.bf16.msra.mxu1 %v1341_v29 }
  0xc5   : > { %1189 = vmatprep.subr.bf16.mxu1 %v1573_v3 }
  0xc7   : > { %591 = vmatpush1.bf16.msra.mxu0 %v1324_v23 }
  0xc8   : > { %817 = vmatprep.subr.bf16.mxu0 %v1328_v26  ;;  %1190 = vmatpush3.bf16.msra.mxu1 %v1345_v32 }
  0xc9   : > { %1195 = vmatprep.subr.bf16.mxu1 %v1573_v3 }
  0xca   : > { %609 = vmatmul.mubr.bf16.vlgmr.msra.gmra.mrb[0].mxu0 %v397_v27 }
  0xcb   : > { %818 = vmatpush1.bf16.msra.mxu0 %v1326_v28  ;;  %849 = vmatprep.mubr.bf16.mxu0 %v1574_v4 }
  0xcc   : > { %819 = vmatprep.subr.bf16.mxu0 %v1332_v30  ;;  %1192 = vmatmul.mubr.bf16.vlgmr.msra.gmra.mrb[0].mxu1 %v397_v27 }
  0xcd   : > { %1196 = vmatpush3.bf16.msra.mxu1 %v1352_v35  ;;  %1211 = vmatprep.mubr.msk.bf16.mxu1 %vm1575_vm0, %v1573_v3 }
  0xce   : > { %1197 = vmatprep.subr.bf16.mxu1 %v1573_v3 }
  0xcf   : > { %820 = vmatpush1.bf16.msra.mxu0 %v1330_v31 }
  0xd0   : > { %821 = vmatprep.subr.bf16.mxu0 %v1336_v33 }
  0xd1   : > { %1198 = vmatpush3.bf16.msra.mxu1 %v1356_v38 }
  0xd2   : > { %1199 = vmatprep.subr.bf16.mxu1 %v1573_v3 }
  0xd3   : > { %822 = vmatpush1.bf16.msra.mxu0 %v1334_v34 }
  0xd4   : > { %823 = vmatprep.subr.bf16.mxu0 %v1340_v36 }
  0xd5   : > { %1200 = vmatpush3.bf16.msra.mxu1 %v1357_v41 }
  0xd6   : > { %1201 = vmatprep.subr.bf16.mxu1 %v1573_v3 }
  0xd7   : > { %824 = vmatpush1.bf16.msra.mxu0 %v1338_v37 }
  0xd8   : > { %825 = vmatprep.subr.bf16.mxu0 %v1344_v39 }
  0xd9   : > { %1202 = vmatpush3.bf16.msra.mxu1 %v1358_v44 }
  0xda   : > { %1203 = vmatprep.subr.bf16.mxu1 %v1573_v3 }
  0xdb   : > { %826 = vmatpush1.bf16.msra.mxu0 %v1342_v40 }
  0xdc   : > { %827 = vmatprep.subr.bf16.mxu0 %v1348_v42 }
  0xdd   : > { %1204 = vmatpush3.bf16.msra.mxu1 %v1359_v47 }
  0xde   : > { %1205 = vmatprep.subr.bf16.mxu1 %v1573_v3 }
  0xdf   : > { %828 = vmatpush1.bf16.msra.mxu0 %v1346_v43 }
  0xe0   : > { %829 = vmatprep.subr.bf16.mxu0 %v1351_v45 }
  0xe1   : > { %1206 = vmatpush3.bf16.msra.mxu1 %v1360_v51 }
  0xe2   : > { %1207 = vmatprep.subr.bf16.mxu1 %v1573_v3 }
  0xe3   : > { %830 = vmatpush1.bf16.msra.mxu0 %v1349_v46 }
  0xe4   : > { %831 = vmatprep.subr.bf16.mxu0 %v1355_v48 }
  0xe5   : > { %1208 = vmatpush3.bf16.msra.mxu1 %v1361_v53 }
  0xe6   : > { %1209 = vmatprep.subr.bf16.mxu1 %v1573_v3 }
  0xe7   : > { %832 = vmatpush1.bf16.msra.mxu0 %v1353_v49 }
  0xe9   : > { %1210 = vmatpush3.bf16.msra.mxu1 %v1362_v54 }
  0xea   : > { %850 = vmatmul.mubr.bf16.vlgmr.msra.gmra.mrb[0].mxu0 %v398_v52 }
  0xec   : > { %1212 = vmatmul.mubr.bf16.vlgmr.msra.gmra.mrb[4].mxu1 %v398_v52 }
 0x19f   : > { %v651_v55 = vpop.f32.mrb[0].mxu1 }
 0x1a0   : > { %v1193_v56 = vpop.f32.mrb[1].mxu1  ;;  %v652_v23 = vadd.f32 %v651_v55, %v444_v19 }
 0x1a1   : > { %v654_v57 = vpop.f32.mrb[2].mxu1 }
 0x1a2   : > { %v1194_v58 = vpop.f32.mrb[3].mxu1 }
 0x1bd   : > { %v851_v1 = vpop.f32.mrb[0].mxu0 }
 0x1be   : > { %v1215_v4 = vadd.f32 %v851_v1, %v436_v0  ;;  %v853_v5 = vpop.f32.mrb[1].mxu0 }
 0x1bf   : > { %v855_v6 = vpop.f32.mrb[2].mxu0  ;;  %v1216_v8 = vadd.f32 %v853_v5, %v440_v2  ;;  %v892_v10 = vpop.f32.mrb[4].mxu1 }
 0x1c0   : > { %v1150_v7 = vmul.f32 -1.442695, %v1215_v4  ;;  %v856_v3 = vpop.f32.mrb[3].mxu0  ;;  %v1213_v11 = vpop.f32.mrb[5].mxu1  ;;  %v919_v21 = vadd.f32 %v1152_v18, %v892_v10 }
 0x1c1   : > { %v1151_v9 = vmul.f32 -1.442695, %v1216_v8  ;;  %v895_v12 = vpop.f32.mrb[6].mxu1 }
 0x1c2   : > { %1363 = vpow2.f32 %v1150_v7  ;;  %v1214_v13 = vpop.f32.mrb[7].mxu1 }
 0x1c3   : > { %1365 = vpow2.f32 %v1151_v9 }
 0x1cc   : > { %v1364_v14 = vpop.eup %1363 }
 0x1cd   : > { %v902_v15 = vadd.f32 1.0, %v1364_v14  ;;  %v1366_v17 = vpop.eup %1365 }
 0x1ce   : > { %v909_v20 = vadd.f32 1.0, %v1366_v17 }
 0x1cf   : > { %1367 = vrcp.f32 %v902_v15 }
 0x1d0   : > { %1369 = vrcp.f32 %v909_v20 }
 0x1d9   : > { %v1368_v22 = vpop.eup %1367 }
 0x1da   : > { %v920_v24 = vmul.f32 %v1368_v22, %v919_v21  ;;  %v1370_v26 = vpop.eup %1369 }
 0x1db   : > { %v923_v27 = vsub.f32 1.0, %v1370_v26  ;;  %v925_v30 = vmul.f32 %v1370_v26, %v395_v50 }
 0x1dc   : > { %v921_v25 = vadd.f32 %v920_v24, %v652_v23 }
 0x1de   : > { %1371 = vtanh.f32 %v921_v25 }
 0x1e8   : > { %v1372_v28 = vpop.eup %1371 }
 0x1e9   : > { %v924_v29 = vmul.f32 %v1372_v28, %v923_v27 }
 0x1eb   : > { %v926_v31 = vadd.f32 %v925_v30, %v924_v29 }
 0x1ed   : > { %927 = vst [vmem:[%s1876_s8] sm:$0xff] %v926_v31  ;;  %928 = vst [vmem:[#allocation2] sm:$0xff] %v926_v31 }
 0x1ee   : > { %1504 = shalt.err (!%p1501_p5)
}
 0x1ef   : > { %s1505_s18 = scalar_lea.hbm %s1962_s23, 128  ;;  %s1509_s12 = scalar_lea.hbm %s2013_s6, 256 }
 0x1f0   : > { %p1506_p8 = scmp.ne.s32.totalorder %s1962_s23, %s1505_s18  ;;  %p1510_p10 = scmp.lt.u32.totalorder %s1962_s23, %s2013_s6 }
 0x1f1   : > { %p1511_p4 = scmp.lt.u32.totalorder %s1509_s12, %s1505_s18  ;;  %p1513_p13 = scmp.lt.u32.totalorder %s1505_s18, %s1962_s23 }
 0x1f2   : > { %p1507_p1 = pnand %p1506_p8, %p2057_p2 }
 0x1f3   : > { %p1512_p0 = por %p1511_p4, %p1510_p10 }
 0x1f4   : > { %p1508_p12 = pneg %p1507_p1 }
 0x1f5   : > { %p1514_p11 = por %p1513_p13, %p1512_p0 }
 0x1f7   : > { %p1515_p9 = pnand %p1514_p11, %p1508_p12 }
 0x1f9   : > { %1518 = shalt.err (!%p1515_p9)
}
 0x1fa   : > { %1237 = dma.vmem_to_hbm [thread:$0]  (%p2057_p2), %s1964_s21, 128, %s1962_s23, %s930_s25  }
 0x1fb PF: > { %s2058_s15 = sld [smem:[#allocation16_spill]]  ;;  %s2059_s9 = sld [smem:[#allocation20_spill]] }
 0x1fc   : > { %p2061_p3 = scmp.ge.s32.totalorder %s1565_s24, 2 }
 0x201   : > { %s955_s1 = sand.u32 1, %s2058_s15   ;;  %p2060_p6 = scmp.ne.s32.totalorder %s2059_s9, 0 }
 0x202   : > { %s956_s16 = scalar_lea.sflag [#allocation5], %s955_s1 }
 0x203   : > { %p1254_p7 = pnand %p2061_p3, %p2060_p6 }
 0x205   : > { %1548 = dma.done.wait (!%p1254_p7), %s956_s16, 128  }
 0x206   : > { %1550 = vsyncadd (!%p1254_p7), %s956_s16, 4294967168  ;;  %s2062_s24 = sld [smem:[#allocation18_spill]]  ;;  %s2063_s8 = sld [smem:[#allocation17_spill]] }
 0x207   : > { %s2064_s23 = sld [smem:[#allocation19_spill]]  ;;  %s2065_s21 = smov %s1557_s22 }
 0x20c   : > { %p23_p5 = scmp.ge.s32.totalorder %s2062_s24, 4   ;;  %s2066_s22 = smov %s2063_s8 }
 0x20e   :  { %25 = sbr.rel (!%p23_p5) target bundleno = 11 (0xb), region = 128 }
 0x215   :  { %961 = vsyncpa [#allocation4], 1 }
 0x216   :  { %963 = vsyncpa [#allocation4 + $0x1], 1 }
 0x217   :  { %964 = vsyncpa [#allocation7], 1 }
 0x218   :  { %966 = vsyncpa [#allocation7 + $0x1], 1 }
 0x219   :  { %967 = vsyncpa [#allocation10], 1 }
 0x21a   :  { %969 = vsyncpa [#allocation10 + $0x1], 1 }
 0x21b   :  { %970 = vsyncpa [#allocation5], 1 }
 0x21c   :  { %972 = vsyncpa [#allocation5 + $0x1], 1 }

</bundles_post_ra>
